<compile_context>
chip_gen: v7x
topology: tpu7x:2x2x1
jax: 0.10.0
libtpu: 0.0.40
codegen_flags: <defaults>
</compile_context>

<pallas_src>
import jax
import jax.numpy as jnp
from jax.experimental import pallas as pl
from jax.experimental.pallas import tpu as pltpu

MIB = 1024 * 1024


def _round_up(x, m):
    return (x + m - 1) // m * m


def _cdiv(a, b):
    return (a + b - 1) // b


def _conv2x2_kernel(w_ref, x_ref, b_ref, o_ref):
    # w_ref: (C_out_p, K_p)  resident weight (compute dtype)
    # x_ref: (K_p, tm)       patch tile: K=(ki,kj,c) on sublanes, output pixels on lanes
    # b_ref: (C_out_p, 1)    bias column (f32)
    # o_ref: (C_out_p, tm)   lane-dense output tile, written straight into NCHW layout
    acc = jnp.dot(w_ref[...], x_ref[...], preferred_element_type=jnp.float32)
    o_ref[...] = (acc + b_ref[...]).astype(o_ref.dtype)


def _vmem_limit_bytes():
    """Generation-aware VMEM cap: ~3/4 of physical (48 MiB on v7x, 96 MiB on v5e/v6e)."""
    phys = 64 * MIB                       # conservative fallback = v7x per-TC size
    try:
        phys = int(getattr(pltpu.get_tpu_info(), "vmem_capacity_bytes", phys))
    except Exception:
        pass
    return max(32 * MIB, min(phys * 3 // 4, 100 * MIB))


def _is_two_core_chip():
    try:
        kind = jax.devices()[0].device_kind.lower()
    except Exception:
        return False
    return ("v7" in kind) or ("7x" in kind)


def _pick_spatial_tile(M, n_batch, K_p, C_out_p, in_itemsize, vmem_limit):
    """Choose the lane-tile size tm (multiple of 128) and padded spatial size M_p."""
    # Per-lane VMEM cost: double-buffered input tile + double-buffered f32 output tile.
    per_lane = 2 * K_p * in_itemsize + 2 * C_out_p * 4
    fixed = 2 * C_out_p * K_p * in_itemsize + 2 * C_out_p * 4   # weight+bias, worst-case 2x
    budget = max(int(vmem_limit * 0.7) - fixed, per_lane * 128)
    tm_max = max(128, budget // per_lane // 128 * 128)

    m128 = _round_up(max(M, 1), 128)          # lane-dense (>=128, unmasked) stores always
    n_tiles = max(1, _cdiv(m128, tm_max))
    # Single-batch, single-tile case: split in two so both v7x TensorCores get work.
    if n_batch == 1 and n_tiles == 1 and m128 >= 256 and _is_two_core_chip():
        n_tiles = 2
    tm = _round_up(_cdiv(m128, n_tiles), 128)
    return tm, tm * n_tiles


def downsample_forward(x, weight, bias, *, compute_dtype=jnp.bfloat16,
                       spatial_tile=None):
    """Conv2d(in_ch, out_ch, kernel_size=2, stride=2, padding=0). NCHW in / NCHW out.

    x:      (N, C_in, H, W)
    weight: (C_out, C_in, 2, 2)   (PyTorch conv weight layout)
    bias:   (C_out,)
    compute_dtype: dtype the patch/weight tiles are fed to the MXU in.  Default bf16
        (f32 accumulation, f32 output) to halve the dominant HBM read; pass None for
        exact f32 numerics.
    spatial_tile: optional override (rounded to a multiple of 128) for the lane tile.
    """
    N, C_in, H, W = x.shape
    C_out = weight.shape[0]
    H2, W2 = H // 2, W // 2
    M = H2 * W2
    K = 4 * C_in
    out_dtype = x.dtype

    cdt = jnp.dtype(compute_dtype) if compute_dtype is not None else jnp.dtype(x.dtype)
    in_itemsize = cdt.itemsize
    sub = 8 if in_itemsize >= 4 else (16 if in_itemsize == 2 else 32)
    K_p = _round_up(K, sub)
    C_out_p = _round_up(C_out, sub)           # multiple of 8, so f32 output tiles legal too

    vmem_limit = _vmem_limit_bytes()
    if spatial_tile is not None:
        tm = _round_up(max(int(spatial_tile), 128), 128)
        M_p = _round_up(max(M, 128), tm)
    else:
        tm, M_p = _pick_spatial_tile(M, N, K_p, C_out_p, in_itemsize, vmem_limit)

    # ---- transposed patch matrix PT: (N, K, M) --------------------------------------
    # xt[n, (ki*2+kj)*C_in + c, h2*W2 + w2] = x[n, c, 2*h2+ki, 2*w2+kj]
    # Built in ONE XLA fusion together with the bf16 downcast + padding, so it costs
    # roughly what the cast alone would; allow_input_fusion below lets XLA additionally
    # fold it into the kernel's input DMA where the backend supports it.
    xc = x.astype(cdt)
    slabs = [xc[:, :, ki:2 * H2:2, kj:2 * W2:2].reshape(N, C_in, M)
             for ki in (0, 1) for kj in (0, 1)]
    xt = jnp.concatenate(slabs, axis=1)                                   # (N, K, M)
    xt = jnp.pad(xt, ((0, 0), (0, K_p - K), (0, M_p - M)))
    xt = xt.reshape(N * K_p, M_p)                                         # free reshape

    # weight (C_out, C_in, 2, 2) -> (C_out, K) in matching (ki, kj, c) order
    wt = jnp.transpose(weight, (0, 2, 3, 1)).reshape(C_out, K).astype(cdt)
    wt = jnp.pad(wt, ((0, C_out_p - C_out), (0, K_p - K)))
    bt = jnp.pad(bias.astype(jnp.float32).reshape(C_out, 1),
                 ((0, C_out_p - C_out), (0, 0)))

    grid = (N, M_p // tm)
    cost = pl.CostEstimate(
        flops=2 * N * C_out * K * M,
        transcendentals=0,
        bytes_accessed=int(xt.size) * in_itemsize + int(wt.size) * in_itemsize
        + int(bt.size) * 4 + N * C_out_p * M_p * jnp.dtype(out_dtype).itemsize)

    def build(advanced):
        resident = dict(pipeline_mode=pl.Buffered(1)) if advanced else {}
        cparams = dict(dimension_semantics=("parallel", "parallel"),
                       vmem_limit_bytes=int(vmem_limit))
        if advanced:
            # weight / patch / bias -> fuse only the patch-matrix producer.
            cparams["allow_input_fusion"] = [False, True, False]
        return pl.pallas_call(
            _conv2x2_kernel,
            out_shape=jax.ShapeDtypeStruct((N * C_out_p, M_p), out_dtype),
            grid_spec=pltpu.PrefetchScalarGridSpec(
                num_scalar_prefetch=0,
                grid=grid,
                in_specs=[
                    pl.BlockSpec((C_out_p, K_p), lambda n, j: (0, 0), **resident),
                    pl.BlockSpec((K_p, tm), lambda n, j: (n, j)),
                    pl.BlockSpec((C_out_p, 1), lambda n, j: (0, 0), **resident),
                ],
                out_specs=pl.BlockSpec((C_out_p, tm), lambda n, j: (n, j)),
            ),
            compiler_params=pltpu.CompilerParams(**cparams),
            cost_estimate=cost,
        )

    try:
        out2d = build(True)(wt, xt, bt)
    except Exception:
        # Older jax/Mosaic builds may reject pipeline_mode / allow_input_fusion.
        out2d = build(False)(wt, xt, bt)

    out = out2d.reshape(N, C_out_p, M_p)[:, :C_out, :M]
    return out.reshape(N, C_out, H2, W2)       # free reshape: already NCHW-ordered


def _reference(x, weight, bias):
    return jax.lax.conv_general_dilated(
        x, weight, window_strides=(2, 2), padding="VALID",
        dimension_numbers=("NCHW", "OIHW", "NCHW")) + bias.reshape(1, -1, 1, 1)


def _make_params(key, c_in, c_out):
    k_w, k_b = jax.random.split(key)
    fan_in = c_in * 2 * 2
    bound = 1.0 / (fan_in ** 0.5)
    weight = jax.random.uniform(k_w, (c_out, c_in, 2, 2),
                                minval=-bound, maxval=bound, dtype=jnp.float32)
    bias = jax.random.uniform(k_b, (c_out,),
                              minval=-bound, maxval=bound, dtype=jnp.float32)
    return weight, bias


if __name__ == "__main__":
    key = jax.random.PRNGKey(0)
    k_x1, k_p1, k_x2, k_p2 = jax.random.split(key, 4)

    # Case 1: the module's nominal small shape (N=2, C_in=4, 16x16 -> C_out=8).
    N, C_in, H, W, C_out = 2, 4, 16, 16, 8
    x1 = jax.random.normal(k_x1, (N, C_in, H, W), dtype=jnp.float32)
    w1, b1 = _make_params(k_p1, C_in, C_out)
    ref1 = jax.block_until_ready(_reference(x1, w1, b1))

    # 1a: default bf16 compute path — compare against a reference run on the same
    #     bf16-rounded inputs (tight), plus shape check.
    y1 = jax.block_until_ready(downsample_forward(x1, w1, b1))
    assert y1.shape == (N, C_out, H // 2, W // 2), y1.shape
    ref1_bf = jax.block_until_ready(_reference(
        x1.astype(jnp.bfloat16).astype(jnp.float32),
        w1.astype(jnp.bfloat16).astype(jnp.float32), b1))
    assert jnp.allclose(y1, ref1_bf, atol=1e-3, rtol=1e-3)

    # 1b: exact f32 path.
    y1f = jax.block_until_ready(downsample_forward(x1, w1, b1, compute_dtype=None))
    assert jnp.allclose(y1f, ref1, atol=1e-5, rtol=1e-5)

    # Case 2: exercises the multi-tile spatial grid (forced 128-lane tiles -> 2 tiles),
    # exact f32 path, single batch.
    x2 = jax.random.normal(k_x2, (1, 8, 32, 32), dtype=jnp.float32)
    w2, b2 = _make_params(k_p2, 8, 16)
    y2 = jax.block_until_ready(
        downsample_forward(x2, w2, b2, compute_dtype=None, spatial_tile=128))
    ref2 = jax.block_until_ready(_reference(x2, w2, b2))
    assert y2.shape == (1, 16, 16, 16), y2.shape
    assert jnp.allclose(y2, ref2, atol=1e-5, rtol=1e-5)

    print("KERNEL_OK")
</pallas_src>

<mosaic_0001>
module attributes {stable_mosaic.version = 11 : i64} {
  func.func @_conv2x2_kernel(%arg0: i32, %arg1: i32, %arg2: memref<16x16xbf16, #tpu.memory_space<vmem>>, %arg3: memref<16x128xbf16, #tpu.memory_space<vmem>>, %arg4: memref<16x1xf32, #tpu.memory_space<vmem>>, %arg5: memref<16x128xf32, #tpu.memory_space<vmem>>) attributes {dimension_semantics = [#tpu.dimension_semantics<parallel>, #tpu.dimension_semantics<parallel>], iteration_bounds = array<i64: 2, 1>, scalar_prefetch = 0 : i64, scratch_operands = 0 : i64, tpu.core_type = #tpu.core_type<tc>, window_params = [{pipeline_mode = #tpu.pipeline_mode<synchronous>, transform_indices = @transform_0, window_bounds = array<i64: 16, 16>}, {transform_indices = @transform_1, window_bounds = array<i64: 16, 128>}, {pipeline_mode = #tpu.pipeline_mode<synchronous>, transform_indices = @transform_2, window_bounds = array<i64: 16, 1>}, {transform_indices = @transform_3, window_bounds = array<i64: 16, 128>}]} {
    %c0 = arith.constant 0 : index
    %c0_0 = arith.constant 0 : index
    %0 = vector.load %arg2[%c0, %c0_0] : memref<16x16xbf16, #tpu.memory_space<vmem>>, vector<16x16xbf16>
    %c0_1 = arith.constant 0 : index
    %c0_2 = arith.constant 0 : index
    %1 = vector.load %arg3[%c0_1, %c0_2] : memref<16x128xbf16, #tpu.memory_space<vmem>>, vector<16x128xbf16>
    %cst = arith.constant dense<0.000000e+00> : vector<16x128xf32>
    %2 = tpu.matmul %0, %1, %cst {dimension_numbers = #tpu.dot_dimension_numbers<[1], [0], [0], [1], [0, 0, 1, 1], [], []>} : vector<16x16xbf16>, vector<16x128xbf16>, vector<16x128xf32> -> vector<16x128xf32>
    %c0_3 = arith.constant 0 : index
    %c0_4 = arith.constant 0 : index
    %3 = vector.load %arg4[%c0_3, %c0_4] : memref<16x1xf32, #tpu.memory_space<vmem>>, vector<16x1xf32>
    %4 = vector.broadcast %3 : vector<16x1xf32> to vector<16x128xf32>
    %5 = arith.addf %2, %4 : vector<16x128xf32>
    %c0_5 = arith.constant 0 : index
    %c0_6 = arith.constant 0 : index
    %6 = vector.load %arg5[%c0_5, %c0_6] : memref<16x128xf32, #tpu.memory_space<vmem>>, vector<16x128xf32>
    tpu.vector_store %arg5[%c0_5, %c0_6], %5 {strides = array<i32>} : memref<16x128xf32, #tpu.memory_space<vmem>>, vector<16x128xf32>,
    return
  }
  func.func @transform_0(%arg0: i32, %arg1: i32) -> (i32, i32) {
    %c0_i32 = arith.constant 0 : i32
    %c0_i32_0 = arith.constant 0 : i32
    %c0_i32_1 = arith.constant 0 : i32
    return %c0_i32, %c0_i32_0 : i32, i32
  }
  func.func @transform_1(%arg0: i32, %arg1: i32) -> (i32, i32) {
    %c0_i32 = arith.constant 0 : i32
    return %arg0, %arg1 : i32, i32
  }
  func.func @transform_2(%arg0: i32, %arg1: i32) -> (i32, i32) {
    %c0_i32 = arith.constant 0 : i32
    %c0_i32_0 = arith.constant 0 : i32
    %c0_i32_1 = arith.constant 0 : i32
    return %c0_i32, %c0_i32_0 : i32, i32
  }
  func.func @transform_3(%arg0: i32, %arg1: i32) -> (i32, i32) {
    %c0_i32 = arith.constant 0 : i32
    return %arg0, %arg1 : i32, i32
  }
}

module attributes {stable_mosaic.version = 11 : i64} {
  func.func @_conv2x2_kernel(%arg0: i32, %arg1: i32, %arg2: memref<16x16xbf16, #tpu.memory_space<vmem>>, %arg3: memref<16x128xbf16, #tpu.memory_space<vmem>>, %arg4: memref<16x1xf32, #tpu.memory_space<vmem>>, %arg5: memref<16x128xf32, #tpu.memory_space<vmem>>) attributes {dimension_semantics = [#tpu.dimension_semantics<parallel>, #tpu.dimension_semantics<parallel>], iteration_bounds = array<i64: 2, 1>, scalar_prefetch = 0 : i64, scratch_operands = 0 : i64, tpu.core_type = #tpu.core_type<tc>, window_params = [{pipeline_mode = #tpu.pipeline_mode<synchronous>, transform_indices = @transform_0, window_bounds = array<i64: 16, 16>}, {transform_indices = @transform_1, window_bounds = array<i64: 16, 128>}, {pipeline_mode = #tpu.pipeline_mode<synchronous>, transform_indices = @transform_2, window_bounds = array<i64: 16, 1>}, {transform_indices = @transform_3, window_bounds = array<i64: 16, 128>}]} {
    %c0 = arith.constant 0 : index
    %c0_0 = arith.constant 0 : index
    %0 = vector.load %arg2[%c0, %c0_0] : memref<16x16xbf16, #tpu.memory_space<vmem>>, vector<16x16xbf16>
    %c0_1 = arith.constant 0 : index
    %c0_2 = arith.constant 0 : index
    %1 = vector.load %arg3[%c0_1, %c0_2] : memref<16x128xbf16, #tpu.memory_space<vmem>>, vector<16x128xbf16>
    %cst = arith.constant dense<0.000000e+00> : vector<16x128xf32>
    %2 = tpu.matmul %0, %1, %cst {dimension_numbers = #tpu.dot_dimension_numbers<[1], [0], [0], [1], [0, 0, 1, 1], [], []>} : vector<16x16xbf16>, vector<16x128xbf16>, vector<16x128xf32> -> vector<16x128xf32>
    %c0_3 = arith.constant 0 : index
    %c0_4 = arith.constant 0 : index
    %3 = vector.load %arg4[%c0_3, %c0_4] : memref<16x1xf32, #tpu.memory_space<vmem>>, vector<16x1xf32>
    %4 = vector.broadcast %3 : vector<16x1xf32> to vector<16x128xf32>
    %5 = arith.addf %2, %4 : vector<16x128xf32>
    %c0_5 = arith.constant 0 : index
    %c0_6 = arith.constant 0 : index
    %6 = vector.load %arg5[%c0_5, %c0_6] : memref<16x128xf32, #tpu.memory_space<vmem>>, vector<16x128xf32>
    tpu.vector_store %arg5[%c0_5, %c0_6], %5 {strides = array<i32>} : memref<16x128xf32, #tpu.memory_space<vmem>>, vector<16x128xf32>,
    return
  }
  func.func @transform_0(%arg0: i32, %arg1: i32) -> (i32, i32) {
    %c0_i32 = arith.constant 0 : i32
    %c0_i32_0 = arith.constant 0 : i32
    %c0_i32_1 = arith.constant 0 : i32
    return %c0_i32, %c0_i32_0 : i32, i32
  }
  func.func @transform_1(%arg0: i32, %arg1: i32) -> (i32, i32) {
    %c0_i32 = arith.constant 0 : i32
    return %arg0, %arg1 : i32, i32
  }
  func.func @transform_2(%arg0: i32, %arg1: i32) -> (i32, i32) {
    %c0_i32 = arith.constant 0 : i32
    %c0_i32_0 = arith.constant 0 : i32
    %c0_i32_1 = arith.constant 0 : i32
    return %c0_i32, %c0_i32_0 : i32, i32
  }
  func.func @transform_3(%arg0: i32, %arg1: i32) -> (i32, i32) {
    %c0_i32 = arith.constant 0 : i32
    return %arg0, %arg1 : i32, i32
  }
}

</mosaic_0001>

<bundles_post_ra>
// kernel: tpu_custom_call.1
= control target key start
LH: loop header
LB: loop body
LE: loop exit
PB: predicated region body
PF: predicated region fallthrough
CT: control target
= control target key end

     0   :  { %8 = vsyncpa [#allocation3], 0  ;;  %s791_s0 = inlined_call_operand.hbm [shape: bf16[16,16], index: 0, kind: input, shape index: {}]   ;;  %s792_s1 = inlined_call_operand.vmem [shape: bf16[32,128], index: 1, kind: input, shape index: {}]   ;;  %s793_s2 = inlined_call_operand.vmem [shape: f32[16,1], index: 2, kind: input, shape index: {}]   ;;  %s794_s3 = inlined_call_operand.hbm [shape: f32[32,128], index: 3, kind: output, shape index: {}]  }
   0x1   :  { %9 = vsyncpa [#allocation4], 0 }
   0x2   :  { %11 = vsyncpa [#allocation4 + $0x1], 0  ;;  %s633_s12 = smov 0   ;;  %s635_s13 = smov 0  }
   0x3   :  { %s637_s14 = smov 0   ;;  %s639_s15 = smov 0  }
   0x4   :  { %s641_s16 = smov 0   ;;  %s643_s17 = smov 0  }
   0x5 LB: > { %s389_s18 = sadd.s32 4294967295, %s602_s17   ;;  %s390_s19 = sadd.s32 4294967294, %s602_s17   ;;  %s602_s17 = sphi %s643_s17, %s17_s17   ;;  %s598_s16 = sphi %s641_s16, %s812_s16   ;;  %s594_s15 = sphi %s639_s15, %s811_s15   ;;  %s590_s14 = sphi %s637_s14, %s810_s14   ;;  %s586_s13 = sphi %s635_s13, %s809_s13   ;;  %s582_s12 = sphi %s633_s12, %s808_s12  }
   0x6   : > { %s29_s20 = sadd.s32 1, %s598_s16  ;;  %s108_s21 = sadd.s32 1, %s590_s14 }
   0x7   : > { %p31_p0 = scmp.ge.s32.totalorder %s29_s20, 2  ;;  %p118_p1 = scmp.ne.s32.totalorder %s590_s14, %s586_s13 }
   0x8   : > { %p119_p2 = scmp.eq.s32.totalorder %s389_s18, 1  ;;  %p124_p3 = scmp.ne.s32.totalorder %s586_s13, %s582_s12 }
   0x9   : > { %s814_s20 = smov (%p31_p0, %s29_s20), 0  ;;  %p125_p5 = scmp.eq.s32.totalorder %s390_s19, 1 }
   0xa   : > { %p673_p4 = por %p119_p2, %p118_p1  ;;  %s103_s23 = ssub.s32 %s598_s16, %s814_s20 }
   0xb   : > { %p391_p6 = scmp.ge.s32.totalorder %s602_s17, 1  ;;  %p106_p7 = scmp.eq.s32.totalorder %s103_s23, 0 }
   0xc   : > { %s799_s22 = scalar_select %p673_p4, 1, 0 }
   0xd   : > { %p680_p8 = por %p125_p5, %p124_p3  ;;  %p132_p9 = scmp.lt.s32.totalorder %s602_s17, 3 }
   0xe   : > { %s686_s25 = scalar_select %p106_p7, %s590_s14, %s108_s21  }
   0xf   : > { %s800_s24 = scalar_select %p680_p8, 1, 0 }
  0x10   : > { %p688_p10 = pnand %p391_p6, %p132_p9  ;;  %p692_p11 = scmp.eq.s32.totalorder %s389_s18, 0 }
  0x11   : > { %s604_s28 = smov [#allocation2]   ;;  %s492_s6 = scalar_lea.hbm %s791_s0, 128 }
  0x12   : > { %s801_s26 = scalar_select %p688_p10, 1, 0 }
  0x13   : > { %s802_s27 = scalar_select %p692_p11, 1, 0 }
  0x14   : > { %p422_p12 = pneg %p688_p10  ;;  %s144_s29 = sshll.u32 %s604_s28, 4  ;;  %s145_s29 = int_to_ptr.vmem [resolvable:$true] %s144_s29 }
  0x15   : > { %p493_p0 = scmp.ne.s32.totalorder %s791_s0, %s492_s6  ;;  %p499_p5 = scmp.lt.u32.totalorder %s492_s6, %s791_s0 }
  0x16   : > { %p700_p13 = pnand %p692_p11, %p422_p12 }
  0x18   : > { %p494_p1 = pneg %p700_p13 }
  0x1a   : > { %p495_p2 = pnand %p494_p1, %p493_p0 }
  0x1c   : > { %p496_p3 = pneg %p495_p2 }
  0x1e   : > { %p501_p6 = pnand %p499_p5, %p496_p3 }
  0x20   : > { %504 = shalt.err (!%p501_p6)
}
  0x21   : > { %s505_s11 = scalar_lea.vmem %s145_s29, 128  ;;  %p513_p8 = scmp.lt.s32.totalorder %s145_s29, %s145_s29 }
  0x22   : > { %p506_p7 = scmp.ne.s32.totalorder %s145_s29, %s505_s11  ;;  %p514_p4 = scmp.lt.s32.totalorder %s505_s11, %s505_s11 }
  0x24   : > { %p508_p9 = pnand %p506_p7, %p494_p1  ;;  %p515_p11 = por %p514_p4, %p513_p8 }
  0x26   : > { %p509_p12 = pneg %p508_p9 }
  0x28   : > { %p516_p10 = pnand %p515_p11, %p509_p12 }
  0x2a   : > { %519 = shalt.err (!%p516_p10)
}
  0x2b   : > { %s605_s18 = smov 64   ;;  %s606_s19 = smov 4  }
  0x2c   : > { %425 = dma.hbm_to_vmem [thread:$0]  (!%p700_p13), %s791_s0, 128, %s145_s29, [#allocation3], %s605_s18, %s605_s18, %s606_s19  }
  0x2d   : > { %p804_p0 = scmp.ne.s32.totalorder %s801_s26, 0 }
  0x2e   : > { %p805_p2 = scmp.ne.s32.totalorder (!%p804_p0), %s802_s27, 0 }
  0x2f   : > { %175 = sbr.rel (%p804_p0) target bundleno = 296 (0x128), region = 32 }
  0x36   : > { %573 = dma.done.wait (%p805_p2), [#allocation3], 128  }
  0x37   : > { %575 = vsyncadd (%p805_p2), [#allocation3], 4294967168  ;;  %s397_s28 = sshll.u32 %s594_s15, 1  ;;  %v607_v0 = vmov 0.0   ;;  %vm608_vm0 = vmmov 0   ;;  %v609_v1 = vmov 0  }
  0x38   : > { %410 = vmatprep.subr.bf16.mxu0 %v607_v0  ;;  %p203_p4 = scmp.lt.s32.totalorder %s397_s28, 3  ;;  %412 = vmatprep.mubr.msk.bf16.mxu0 %vm608_vm0, %v607_v0  ;;  %v491_v3 = vld [vmem:[#allocation2] sm:$0xff]   ;;  %vm240_vm1 = vcmask 130048   ;;  %v218_v5 = vld [vmem:[%s793_s2 + $0x8] sm:$0xff]  ;;  %s199_s8 = sand.u32 1, %s586_s13  }
  0x39   : > { %489 = vset.pattern.permute.xlu0 %v609_v1  ;;  %v217_v4 = vld [vmem:[%s793_s2] sm:$0xff]  ;;  %s396_s9 = sshll.u32 %s199_s8, 4  ;;  %s407_s18 = sshll.u32 %s594_s15, 8 }
  0x3a   : > { %s816_s28 = smov (!%p203_p4, %s397_s28), 3  ;;  %221 = vperm.xlu0 %489, %v217_v4   ;;  %s201_s10 = scalar_lea.vmem [#allocation5], %s396_s9 }
  0x3b   : > { %s398_s29 = sshll.u32 %s816_s28, 2  ;;  %s302_s11 = sshll.u32 %s201_s10, 4  ;;  %s738_s11 = int_to_ptr.vmem [resolvable:$true] %s302_s11 }
  0x3c   : > { %s209_s4 = scalar_lea.vmem %s792_s1, %s398_s29  ;;  %s743_s23 = scalar_lea.hbm %s794_s3, %s407_s18 }
  0x3d   : > { %v490_v2 = vld [vmem:[%s209_s4] sm:$0xff]   ;;  %s745_s15 = scalar_lea.sflag [#allocation4], %s199_s8  ;;  %s520_s28 = scalar_lea.vmem %s738_s11, 256 }
  0x3e   : > { %411 = vmatpush3.bf16.msra.mxu0 %v490_v2  ;;  %226 = vperm.xlu0 %489, %v218_v5   ;;  %p521_p8 = scmp.ne.s32.totalorder %s738_s11, %s520_s28  ;;  %p806_p10 = scmp.ne.s32.totalorder %s799_s22, 0 }
  0x3f   : > { %s610_s29 = smov [#allocation5]  }
  0x40   : > { %p522_p11 = pnand %p521_p8, %p806_p10  ;;  %s524_s26 = sshll.u32 %s610_s29, 4  ;;  %s525_s26 = int_to_ptr.vmem [resolvable:$false] %s524_s26 }
  0x41   : > { %413 = vmatmul.mubr.msk.bf16.vlgmr.msra.gmra.mrb[0].mxu0 %vm240_vm1, %v491_v3  ;;  %s526_s30 = scalar_lea.vmem %s525_s26, 512  ;;  %p527_p1 = scmp.lt.s32.totalorder %s738_s11, %s525_s26 }
  0x42   : > { %p523_p13 = pneg %p522_p11  ;;  %p528_p3 = scmp.lt.s32.totalorder %s526_s30, %s520_s28 }
  0x44   : > { %p529_p5 = por %p528_p3, %p527_p1 }
  0x46   : > { %p530_p6 = pnand %p529_p5, %p523_p13 }
  0xb9   : > { %v222_v6 = vpop.permute.xlu0 %221 }
  0xbd   : > { %v227_v10 = vpop.permute.xlu0 %226 }
 0x114   : > { %v278_v7 = vpop.f32.mrb[0].mxu0 }
 0x115   : > { %v279_v8 = vadd.f32 %v278_v7, %v222_v6  ;;  %v414_v9 = vpop.f32.mrb[1].mxu0 }
 0x116   : > { %v281_v11 = vpop.f32.mrb[2].mxu0 }
 0x117   : > { %285 = vst [vmem:[%s201_s10] sm:$0xff] %v279_v8  ;;  %v282_v12 = vadd.f32 %v281_v11, %v227_v10  ;;  %v415_v13 = vpop.f32.mrb[3].mxu0 }
 0x119   : > { %286 = vst [vmem:[%s201_s10 + $0x8] sm:$0xff] %v282_v12 }
 0x11a   : > { %533 = shalt.err (!%p530_p6)
}
 0x11b   : > { %s534_s4 = scalar_lea.hbm %s743_s23, 256  ;;  %s538_s6 = scalar_lea.hbm %s794_s3, 512 }
 0x11c   : > { %p535_p7 = scmp.ne.s32.totalorder %s743_s23, %s534_s4  ;;  %p539_p0 = scmp.lt.u32.totalorder %s743_s23, %s794_s3 }
 0x11d   : > { %p540_p2 = scmp.lt.u32.totalorder %s538_s6, %s534_s4  ;;  %p542_p8 = scmp.lt.u32.totalorder %s534_s4, %s743_s23 }
 0x11e   : > { %p536_p9 = pnand %p535_p7, %p806_p10 }
 0x11f   : > { %p541_p4 = por %p540_p2, %p539_p0 }
 0x120   : > { %p537_p12 = pneg %p536_p9 }
 0x121   : > { %p543_p11 = por %p542_p8, %p541_p4 }
 0x123   : > { %p544_p13 = pnand %p543_p11, %p537_p12 }
 0x125   : > { %547 = shalt.err (!%p544_p13)
}
 0x126   : > { %s611_s9 = smov 128   ;;  %s612_s10 = smov 8  }
 0x127   : > { %420 = dma.vmem_to_hbm [thread:$0]  (%p806_p10), %s738_s11, 256, %s743_s23, %s745_s15, %s611_s9, %s611_s9, %s612_s10  }
 0x128 PF: > { %p432_p1 = scmp.ge.s32.totalorder %s602_s17, 2  ;;  %s317_s18 = sand.u32 1, %s582_s12  }
 0x129   : > { %p807_p3 = scmp.ne.s32.totalorder %s800_s24, 0  ;;  %s318_s19 = scalar_lea.sflag [#allocation4], %s317_s18 }
 0x12b   : > { %p427_p5 = pnand %p432_p1, %p807_p3 }
 0x12d   : > { %577 = dma.done.wait (!%p427_p5), %s318_s19, 256  }
 0x12e   : > { %579 = vsyncadd (!%p427_p5), %s318_s19, 4294967040  ;;  %s17_s17 = sadd.s32 1, %s602_s17   ;;  %s808_s12 = smov %s586_s13 }
 0x12f   : > { %p14_p6 = scmp.ge.s32.totalorder %s17_s17, 4   ;;  %s809_s13 = smov %s590_s14 }
 0x130   : > { %s810_s14 = smov %s686_s25  ;;  %s811_s15 = smov %s598_s16 }
 0x131   : > { %s812_s16 = smov %s814_s20  ;;  %16 = sbr.rel (!%p14_p6) target bundleno = 5 (0x5), region = 72 }
 0x138   :  { %323 = vsyncpa [#allocation3], 1 }
 0x139   :  { %325 = vsyncpa [#allocation3 + $0x1], 1 }
 0x13a   :  { %326 = vsyncpa [#allocation4], 1 }
 0x13b   :  { %328 = vsyncpa [#allocation4 + $0x1], 1 }

// kernel: tpu_custom_call.1
= control target key start
LH: loop header
LB: loop body
LE: loop exit
PB: predicated region body
PF: predicated region fallthrough
CT: control target
= control target key end

     0   :  { %8 = vsyncpa [#allocation3], 0  ;;  %s791_s0 = inlined_call_operand.hbm [shape: bf16[16,16], index: 0, kind: input, shape index: {}]   ;;  %s792_s1 = inlined_call_operand.vmem [shape: bf16[32,128], index: 1, kind: input, shape index: {}]   ;;  %s793_s2 = inlined_call_operand.vmem [shape: f32[16,1], index: 2, kind: input, shape index: {}]   ;;  %s794_s3 = inlined_call_operand.hbm [shape: f32[32,128], index: 3, kind: output, shape index: {}]  }
   0x1   :  { %9 = vsyncpa [#allocation4], 0 }
   0x2   :  { %11 = vsyncpa [#allocation4 + $0x1], 0  ;;  %s633_s12 = smov 0   ;;  %s635_s13 = smov 0  }
   0x3   :  { %s637_s14 = smov 0   ;;  %s639_s15 = smov 0  }
   0x4   :  { %s641_s16 = smov 0   ;;  %s643_s17 = smov 0  }
   0x5 LB: > { %s389_s18 = sadd.s32 4294967295, %s602_s17   ;;  %s390_s19 = sadd.s32 4294967294, %s602_s17   ;;  %s602_s17 = sphi %s643_s17, %s17_s17   ;;  %s598_s16 = sphi %s641_s16, %s812_s16   ;;  %s594_s15 = sphi %s639_s15, %s811_s15   ;;  %s590_s14 = sphi %s637_s14, %s810_s14   ;;  %s586_s13 = sphi %s635_s13, %s809_s13   ;;  %s582_s12 = sphi %s633_s12, %s808_s12  }
   0x6   : > { %s29_s20 = sadd.s32 1, %s598_s16  ;;  %s108_s21 = sadd.s32 1, %s590_s14 }
   0x7   : > { %p31_p0 = scmp.ge.s32.totalorder %s29_s20, 2  ;;  %p118_p1 = scmp.ne.s32.totalorder %s590_s14, %s586_s13 }
   0x8   : > { %p119_p2 = scmp.eq.s32.totalorder %s389_s18, 1  ;;  %p124_p3 = scmp.ne.s32.totalorder %s586_s13, %s582_s12 }
   0x9   : > { %s814_s20 = smov (%p31_p0, %s29_s20), 0  ;;  %p125_p5 = scmp.eq.s32.totalorder %s390_s19, 1 }
   0xa   : > { %p673_p4 = por %p119_p2, %p118_p1  ;;  %s103_s23 = ssub.s32 %s598_s16, %s814_s20 }
   0xb   : > { %p391_p6 = scmp.ge.s32.totalorder %s602_s17, 1  ;;  %p106_p7 = scmp.eq.s32.totalorder %s103_s23, 0 }
   0xc   : > { %s799_s22 = scalar_select %p673_p4, 1, 0 }
   0xd   : > { %p680_p8 = por %p125_p5, %p124_p3  ;;  %p132_p9 = scmp.lt.s32.totalorder %s602_s17, 3 }
   0xe   : > { %s686_s25 = scalar_select %p106_p7, %s590_s14, %s108_s21  }
   0xf   : > { %s800_s24 = scalar_select %p680_p8, 1, 0 }
  0x10   : > { %p688_p10 = pnand %p391_p6, %p132_p9  ;;  %p692_p11 = scmp.eq.s32.totalorder %s389_s18, 0 }
  0x11   : > { %s604_s28 = smov [#allocation2]   ;;  %s492_s6 = scalar_lea.hbm %s791_s0, 128 }
  0x12   : > { %s801_s26 = scalar_select %p688_p10, 1, 0 }
  0x13   : > { %s802_s27 = scalar_select %p692_p11, 1, 0 }
  0x14   : > { %p422_p12 = pneg %p688_p10  ;;  %s144_s29 = sshll.u32 %s604_s28, 4  ;;  %s145_s29 = int_to_ptr.vmem [resolvable:$true] %s144_s29 }
  0x15   : > { %p493_p0 = scmp.ne.s32.totalorder %s791_s0, %s492_s6  ;;  %p499_p5 = scmp.lt.u32.totalorder %s492_s6, %s791_s0 }
  0x16   : > { %p700_p13 = pnand %p692_p11, %p422_p12 }
  0x18   : > { %p494_p1 = pneg %p700_p13 }
  0x1a   : > { %p495_p2 = pnand %p494_p1, %p493_p0 }
  0x1c   : > { %p496_p3 = pneg %p495_p2 }
  0x1e   : > { %p501_p6 = pnand %p499_p5, %p496_p3 }
  0x20   : > { %504 = shalt.err (!%p501_p6)
}
  0x21   : > { %s505_s11 = scalar_lea.vmem %s145_s29, 128  ;;  %p513_p8 = scmp.lt.s32.totalorder %s145_s29, %s145_s29 }
  0x22   : > { %p506_p7 = scmp.ne.s32.totalorder %s145_s29, %s505_s11  ;;  %p514_p4 = scmp.lt.s32.totalorder %s505_s11, %s505_s11 }
  0x24   : > { %p508_p9 = pnand %p506_p7, %p494_p1  ;;  %p515_p11 = por %p514_p4, %p513_p8 }
  0x26   : > { %p509_p12 = pneg %p508_p9 }
  0x28   : > { %p516_p10 = pnand %p515_p11, %p509_p12 }
  0x2a   : > { %519 = shalt.err (!%p516_p10)
}
  0x2b   : > { %s605_s18 = smov 64   ;;  %s606_s19 = smov 4  }
  0x2c   : > { %425 = dma.hbm_to_vmem [thread:$0]  (!%p700_p13), %s791_s0, 128, %s145_s29, [#allocation3], %s605_s18, %s605_s18, %s606_s19  }
  0x2d   : > { %p804_p0 = scmp.ne.s32.totalorder %s801_s26, 0 }
  0x2e   : > { %p805_p2 = scmp.ne.s32.totalorder (!%p804_p0), %s802_s27, 0 }
  0x2f   : > { %175 = sbr.rel (%p804_p0) target bundleno = 296 (0x128), region = 32 }
  0x36   : > { %573 = dma.done.wait (%p805_p2), [#allocation3], 128  }
  0x37   : > { %575 = vsyncadd (%p805_p2), [#allocation3], 4294967168  ;;  %s397_s28 = sshll.u32 %s594_s15, 1  ;;  %v607_v0 = vmov 0.0   ;;  %vm608_vm0 = vmmov 0   ;;  %v609_v1 = vmov 0  }
  0x38   : > { %410 = vmatprep.subr.bf16.mxu0 %v607_v0  ;;  %p203_p4 = scmp.lt.s32.totalorder %s397_s28, 3  ;;  %412 = vmatprep.mubr.msk.bf16.mxu0 %vm608_vm0, %v607_v0  ;;  %v491_v3 = vld [vmem:[#allocation2] sm:$0xff]   ;;  %vm240_vm1 = vcmask 130048   ;;  %v218_v5 = vld [vmem:[%s793_s2 + $0x8] sm:$0xff]  ;;  %s199_s8 = sand.u32 1, %s586_s13  }
  0x39   : > { %489 = vset.pattern.permute.xlu0 %v609_v1  ;;  %v217_v4 = vld [vmem:[%s793_s2] sm:$0xff]  ;;  %s396_s9 = sshll.u32 %s199_s8, 4  ;;  %s407_s18 = sshll.u32 %s594_s15, 8 }
  0x3a   : > { %s816_s28 = smov (!%p203_p4, %s397_s28), 3  ;;  %221 = vperm.xlu0 %489, %v217_v4   ;;  %s201_s10 = scalar_lea.vmem [#allocation5], %s396_s9 }
  0x3b   : > { %s398_s29 = sshll.u32 %s816_s28, 2  ;;  %s302_s11 = sshll.u32 %s201_s10, 4  ;;  %s738_s11 = int_to_ptr.vmem [resolvable:$true] %s302_s11 }
  0x3c   : > { %s209_s4 = scalar_lea.vmem %s792_s1, %s398_s29  ;;  %s743_s23 = scalar_lea.hbm %s794_s3, %s407_s18 }
  0x3d   : > { %v490_v2 = vld [vmem:[%s209_s4] sm:$0xff]   ;;  %s745_s15 = scalar_lea.sflag [#allocation4], %s199_s8  ;;  %s520_s28 = scalar_lea.vmem %s738_s11, 256 }
  0x3e   : > { %411 = vmatpush3.bf16.msra.mxu0 %v490_v2  ;;  %226 = vperm.xlu0 %489, %v218_v5   ;;  %p521_p8 = scmp.ne.s32.totalorder %s738_s11, %s520_s28  ;;  %p806_p10 = scmp.ne.s32.totalorder %s799_s22, 0 }
  0x3f   : > { %s610_s29 = smov [#allocation5]  }
  0x40   : > { %p522_p11 = pnand %p521_p8, %p806_p10  ;;  %s524_s26 = sshll.u32 %s610_s29, 4  ;;  %s525_s26 = int_to_ptr.vmem [resolvable:$false] %s524_s26 }
  0x41   : > { %413 = vmatmul.mubr.msk.bf16.vlgmr.msra.gmra.mrb[0].mxu0 %vm240_vm1, %v491_v3  ;;  %s526_s30 = scalar_lea.vmem %s525_s26, 512  ;;  %p527_p1 = scmp.lt.s32.totalorder %s738_s11, %s525_s26 }
  0x42   : > { %p523_p13 = pneg %p522_p11  ;;  %p528_p3 = scmp.lt.s32.totalorder %s526_s30, %s520_s28 }
  0x44   : > { %p529_p5 = por %p528_p3, %p527_p1 }
  0x46   : > { %p530_p6 = pnand %p529_p5, %p523_p13 }
  0xb9   : > { %v222_v6 = vpop.permute.xlu0 %221 }
  0xbd   : > { %v227_v10 = vpop.permute.xlu0 %226 }
 0x114   : > { %v278_v7 = vpop.f32.mrb[0].mxu0 }
 0x115   : > { %v279_v8 = vadd.f32 %v278_v7, %v222_v6  ;;  %v414_v9 = vpop.f32.mrb[1].mxu0 }
 0x116   : > { %v281_v11 = vpop.f32.mrb[2].mxu0 }
 0x117   : > { %285 = vst [vmem:[%s201_s10] sm:$0xff] %v279_v8  ;;  %v282_v12 = vadd.f32 %v281_v11, %v227_v10  ;;  %v415_v13 = vpop.f32.mrb[3].mxu0 }
 0x119   : > { %286 = vst [vmem:[%s201_s10 + $0x8] sm:$0xff] %v282_v12 }
 0x11a   : > { %533 = shalt.err (!%p530_p6)
}
 0x11b   : > { %s534_s4 = scalar_lea.hbm %s743_s23, 256  ;;  %s538_s6 = scalar_lea.hbm %s794_s3, 512 }
 0x11c   : > { %p535_p7 = scmp.ne.s32.totalorder %s743_s23, %s534_s4  ;;  %p539_p0 = scmp.lt.u32.totalorder %s743_s23, %s794_s3 }
 0x11d   : > { %p540_p2 = scmp.lt.u32.totalorder %s538_s6, %s534_s4  ;;  %p542_p8 = scmp.lt.u32.totalorder %s534_s4, %s743_s23 }
 0x11e   : > { %p536_p9 = pnand %p535_p7, %p806_p10 }
 0x11f   : > { %p541_p4 = por %p540_p2, %p539_p0 }
 0x120   : > { %p537_p12 = pneg %p536_p9 }
 0x121   : > { %p543_p11 = por %p542_p8, %p541_p4 }
 0x123   : > { %p544_p13 = pnand %p543_p11, %p537_p12 }
 0x125   : > { %547 = shalt.err (!%p544_p13)
}
 0x126   : > { %s611_s9 = smov 128   ;;  %s612_s10 = smov 8  }
 0x127   : > { %420 = dma.vmem_to_hbm [thread:$0]  (%p806_p10), %s738_s11, 256, %s743_s23, %s745_s15, %s611_s9, %s611_s9, %s612_s10  }
 0x128 PF: > { %p432_p1 = scmp.ge.s32.totalorder %s602_s17, 2  ;;  %s317_s18 = sand.u32 1, %s582_s12  }
 0x129   : > { %p807_p3 = scmp.ne.s32.totalorder %s800_s24, 0  ;;  %s318_s19 = scalar_lea.sflag [#allocation4], %s317_s18 }
 0x12b   : > { %p427_p5 = pnand %p432_p1, %p807_p3 }
 0x12d   : > { %577 = dma.done.wait (!%p427_p5), %s318_s19, 256  }
 0x12e   : > { %579 = vsyncadd (!%p427_p5), %s318_s19, 4294967040  ;;  %s17_s17 = sadd.s32 1, %s602_s17   ;;  %s808_s12 = smov %s586_s13 }
 0x12f   : > { %p14_p6 = scmp.ge.s32.totalorder %s17_s17, 4   ;;  %s809_s13 = smov %s590_s14 }
 0x130   : > { %s810_s14 = smov %s686_s25  ;;  %s811_s15 = smov %s598_s16 }
 0x131   : > { %s812_s16 = smov %s814_s20  ;;  %16 = sbr.rel (!%p14_p6) target bundleno = 5 (0x5), region = 72 }
 0x138   :  { %323 = vsyncpa [#allocation3], 1 }
 0x139   :  { %325 = vsyncpa [#allocation3 + $0x1], 1 }
 0x13a   :  { %326 = vsyncpa [#allocation4], 1 }
 0x13b   :  { %328 = vsyncpa [#allocation4 + $0x1], 1 }

</bundles_post_ra>
